<compile_context>
chip_gen: v6e
topology: v6e:2x2x1
jax: 0.10.0
libtpu: 0.0.40
codegen_flags: <defaults>
</compile_context>

<pallas_src>
from functools import partial as _functools_partial

import jax
import jax.numpy as jnp
from jax.experimental import pallas as pl
from jax.experimental.pallas import tpu as pltpu


def _round_up(x, m):
    return ((x + m - 1) // m) * m


def _smooth_ce_partial_kernel(pred_ref, tgt_ref, out_ref, *,
                              num_classes, label_smoothing,
                              total_rows, tile_rows, chunk_rows, num_chunks):
    """Per-tile partial sum of label-smoothed cross-entropy rows.

    ce_row = lse(x) - sum_c w_c * x_c,  w_c = ls/C + (1-ls)*[c == target].
    The tile is processed in `num_chunks` chunks of `chunk_rows` rows each.
    """
    i = pl.program_id(0)
    on_w = jnp.float32(1.0 - label_smoothing + label_smoothing / num_classes)
    off_w = jnp.float32(label_smoothing / num_classes)

    def chunk_ce_sum(r0):
        x = pred_ref[pl.ds(r0, chunk_rows), :].astype(jnp.float32)   # (CR, C)
        t = tgt_ref[pl.ds(r0, chunk_rows), :]                        # (CR, 1)

        # Validity mask for rows of a (possibly padded) last tile.
        row = (jax.lax.broadcasted_iota(jnp.int32, (chunk_rows, 1), 0)
               + i * tile_rows + r0)
        valid = row < total_rows                                      # (CR, 1)

        # logsumexp over the class (lane) axis.
        m = jnp.max(x, axis=1, keepdims=True)
        lse = m + jnp.log(jnp.sum(jnp.exp(x - m), axis=1, keepdims=True))

        # Single weighted class-axis reduction merging the x[target] and
        # sum_j x_j terms (one XLU pass instead of two).
        cls = jax.lax.broadcasted_iota(jnp.int32, x.shape, 1)
        w = jnp.where(cls == t, on_w, off_w)
        wx = jnp.sum(w * x, axis=1, keepdims=True)

        ce_rows = jnp.where(valid, lse - wx, 0.0)
        return jnp.sum(ce_rows)

    if num_chunks == 1:
        tile_sum = chunk_ce_sum(0)
    else:
        def body(c, acc):
            r0 = pl.multiple_of(c * chunk_rows, chunk_rows)
            return acc + chunk_ce_sum(r0)
        tile_sum = jax.lax.fori_loop(0, num_chunks, body, jnp.float32(0.0))

    # Lane-dense output block; wrapper reads lane 0 of each tile.
    out_ref[...] = jnp.full(out_ref.shape, tile_sum, dtype=jnp.float32)


def smooth_pauc_loss_multiclass(predictions, targets, *,
                                recall_range=(0.95, 1.0), lambda_fpr=1.0,
                                num_classes=101, label_smoothing=0.1,
                                tile_rows=4096, chunk_rows=256):
    """Label-smoothed CE + constant pAUC term (see module note).

    Feed `predictions` in their native dtype (bf16 preferred on v5e/v6e) --
    the kernel upcasts to f32 in VMEM, so a wrapper-side f32 cast would only
    double HBM traffic.
    """
    assert label_smoothing > 0.0, "kernel implements the label_smoothing>0 path"
    B, C = predictions.shape
    assert C == num_classes
    _ = recall_range[1] - recall_range[0]  # max_pauc (unused on degenerate path)

    tgt2d = targets.astype(jnp.int32).reshape(B, 1)

    # --- tile / chunk selection --------------------------------------------
    # >= 2 grid tiles whenever B > 64 so both v7x TensorCores get work; large
    # tiles amortize the per-grid-step overhead; row chunks bound register /
    # VMEM-temporary pressure inside a tile.
    half = pl.cdiv(B, 2)
    if B <= 64:
        TB = B
    elif half <= chunk_rows:
        TB = _round_up(half, 8)
    else:
        TB = min(_round_up(half, chunk_rows), _round_up(tile_rows, chunk_rows))
    num_tiles = pl.cdiv(B, TB)

    if TB > chunk_rows and TB % chunk_rows == 0 and chunk_rows % 8 == 0:
        CHUNK = chunk_rows
    else:
        CHUNK = TB
    num_chunks = TB // CHUNK

    # --- derived VMEM budget (double-buffered blocks + headroom) ------------
    pred_block = TB * 128 * predictions.dtype.itemsize   # lane-padded C -> 128
    tgt_block = TB * 512                                  # (TB,1) i32 sublane tiles
    out_block = 8 * 128 * 4
    vmem_limit = int(min(64 * 1024 * 1024,
                         max(16 * 1024 * 1024,
                             4 * (pred_block + tgt_block + out_block))))

    cost = pl.CostEstimate(
        flops=5 * B * C,
        transcendentals=B * C,
        bytes_accessed=B * C * predictions.dtype.itemsize + B * 4
                       + num_tiles * 128 * 4)

    kernel = _functools_partial(_smooth_ce_partial_kernel,
                                num_classes=num_classes,
                                label_smoothing=label_smoothing,
                                total_rows=B,
                                tile_rows=TB,
                                chunk_rows=CHUNK,
                                num_chunks=num_chunks)

    partials = pl.pallas_call(
        kernel,
        out_shape=jax.ShapeDtypeStruct((num_tiles, 128), jnp.float32),
        grid=(num_tiles,),
        in_specs=[
            pl.BlockSpec((TB, C), lambda i: (i, 0)),
            pl.BlockSpec((TB, 1), lambda i: (i, 0)),
        ],
        out_specs=pl.BlockSpec((1, 128), lambda i: (i, 0)),
        compiler_params=pltpu.CompilerParams(
            dimension_semantics=("parallel",),
            vmem_limit_bytes=vmem_limit),
        cost_estimate=cost,
    )(predictions, tgt2d)

    ce = jnp.sum(partials[:, 0]) / B

    # Degenerate ROC path under label smoothing (see module-level note):
    # label-smoothed targets never compare equal to exact 0/1, so every
    # per-class pAUC is 0.0 and avg_p_auc == 0.
    avg_p_auc = 0.0
    # TODO(synk): the sort-based ROC curve + trapezoidal pAUC (only reachable
    # when label_smoothing == 0) has no clean Pallas equivalent.

    return ce - lambda_fpr * (avg_p_auc - 1.0)


def _reference_loss(predictions, targets, *, lambda_fpr=1.0,
                    num_classes=101, label_smoothing=0.1):
    # Pure-JAX mirror of the (degenerate-ROC) PyTorch forward, for verification.
    logp = jax.nn.log_softmax(predictions.astype(jnp.float32), axis=1)
    onehot = jax.nn.one_hot(targets, num_classes, dtype=jnp.float32)
    smoothed = (1.0 - label_smoothing) * onehot + label_smoothing / num_classes
    ce = jnp.mean(-jnp.sum(smoothed * logp, axis=1))
    avg_p_auc = 0.0
    return ce - lambda_fpr * (avg_p_auc - 1.0)


if __name__ == "__main__":
    key = jax.random.PRNGKey(0)
    k1, k2, k3, k4, k5, k6 = jax.random.split(key, 6)

    C = 101  # default num_classes

    # Case 1: tiny batch -> single tile, single chunk (block == full array).
    B1 = 8
    pred1 = jax.random.normal(k1, (B1, C), dtype=jnp.float32)
    tgt1 = jax.random.randint(k2, (B1,), 0, C, dtype=jnp.int32)
    loss1 = jax.block_until_ready(smooth_pauc_loss_multiclass(pred1, tgt1))
    ref1 = _reference_loss(pred1, tgt1)
    assert jnp.allclose(loss1, ref1, rtol=1e-5, atol=1e-5), (loss1, ref1)

    # Case 2: B > 64 with small chunk_rows -> 2 grid tiles, multi-chunk
    # fori_loop path, and padded-row masking in the last tile's chunks.
    B2 = 77
    pred2 = jax.random.normal(k3, (B2, C), dtype=jnp.float32)
    tgt2 = jax.random.randint(k4, (B2,), 0, C, dtype=jnp.int32)
    loss2 = jax.block_until_ready(
        smooth_pauc_loss_multiclass(pred2, tgt2, chunk_rows=8))
    ref2 = _reference_loss(pred2, tgt2)
    assert jnp.allclose(loss2, ref2, rtol=1e-5, atol=1e-5), (loss2, ref2)

    # Case 3: bf16 logits fed in their native dtype (no wrapper-side f32 cast),
    # 2 tiles, single chunk per tile.
    B3 = 96
    pred3 = jax.random.normal(k5, (B3, C), dtype=jnp.bfloat16)
    tgt3 = jax.random.randint(k6, (B3,), 0, C, dtype=jnp.int32)
    loss3 = jax.block_until_ready(smooth_pauc_loss_multiclass(pred3, tgt3))
    ref3 = _reference_loss(pred3, tgt3)
    assert jnp.allclose(loss3, ref3, rtol=1e-4, atol=1e-4), (loss3, ref3)

    print("KERNEL_OK")
</pallas_src>

<mosaic_0001>
module attributes {stable_mosaic.version = 11 : i64} {
  func.func @_smooth_ce_partial_kernel(%arg0: i32, %arg1: memref<8x101xf32, #tpu.memory_space<vmem>>, %arg2: memref<8x1xi32, #tpu.memory_space<vmem>>, %arg3: memref<1x128xf32, #tpu.memory_space<vmem>>) attributes {dimension_semantics = [#tpu.dimension_semantics<parallel>], iteration_bounds = array<i64: 1>, scalar_prefetch = 0 : i64, scratch_operands = 0 : i64, tpu.core_type = #tpu.core_type<tc>, window_params = [{transform_indices = @transform_0, window_bounds = array<i64: 8, 101>}, {transform_indices = @transform_1, window_bounds = array<i64: 8, 1>}, {transform_indices = @transform_2, window_bounds = array<i64: 1, 128>}]} {
    %c0 = arith.constant 0 : index
    %c0_0 = arith.constant 0 : index
    %0 = vector.load %arg1[%c0, %c0_0] : memref<8x101xf32, #tpu.memory_space<vmem>>, vector<8x101xf32>
    %c0_1 = arith.constant 0 : index
    %c0_2 = arith.constant 0 : index
    %1 = vector.load %arg2[%c0_1, %c0_2] : memref<8x1xi32, #tpu.memory_space<vmem>>, vector<8x1xi32>
    %2 = tpu.iota {dimensions = array<i32: 0>} : vector<8x1xi32>
    %c8_i32 = arith.constant 8 : i32
    %3 = arith.muli %arg0, %c8_i32 : i32
    %4 = vector.broadcast %3 : i32 to vector<8x1xi32>
    %5 = arith.addi %2, %4 : vector<8x1xi32>
    %c0_i32 = arith.constant 0 : i32
    %6 = vector.broadcast %c0_i32 : i32 to vector<8x1xi32>
    %7 = arith.addi %5, %6 : vector<8x1xi32>
    %c8_i32_3 = arith.constant 8 : i32
    %8 = vector.broadcast %c8_i32_3 : i32 to vector<8x1xi32>
    %9 = arith.cmpi slt, %7, %8 : vector<8x1xi32>
    %cst = arith.constant dense<0xFF800000> : vector<8xf32>
    %10 = vector.multi_reduction <maximumf>, %0, %cst [1] : vector<8x101xf32> to vector<8xf32>
    %11 = vector.shape_cast %10 : vector<8xf32> to vector<8x1xf32>
    %12 = vector.broadcast %11 : vector<8x1xf32> to vector<8x101xf32>
    %13 = arith.subf %0, %12 : vector<8x101xf32>
    %14 = math.exp %13 : vector<8x101xf32>
    %cst_4 = arith.constant dense<0.000000e+00> : vector<8xf32>
    %15 = vector.multi_reduction <add>, %14, %cst_4 [1] : vector<8x101xf32> to vector<8xf32>
    %16 = vector.shape_cast %15 : vector<8xf32> to vector<8x1xf32>
    %17 = math.log %16 : vector<8x1xf32>
    %18 = arith.addf %11, %17 : vector<8x1xf32>
    %19 = tpu.iota {dimensions = array<i32: 1>} : vector<8x101xi32>
    %20 = vector.broadcast %1 : vector<8x1xi32> to vector<8x101xi32>
    %21 = arith.cmpi eq, %19, %20 : vector<8x101xi32>
    %cst_5 = arith.constant 0.900990128 : f32
    %cst_6 = arith.constant 9.900990e-04 : f32
    %22 = vector.broadcast %cst_5 : f32 to vector<8x101xf32>
    %23 = vector.broadcast %cst_6 : f32 to vector<8x101xf32>
    %24 = arith.select %21, %22, %23 : vector<8x101xi1>, vector<8x101xf32>
    %25 = arith.mulf %24, %0 : vector<8x101xf32>
    %cst_7 = arith.constant dense<0.000000e+00> : vector<8xf32>
    %26 = vector.multi_reduction <add>, %25, %cst_7 [1] : vector<8x101xf32> to vector<8xf32>
    %27 = vector.shape_cast %26 : vector<8xf32> to vector<8x1xf32>
    %28 = arith.subf %18, %27 : vector<8x1xf32>
    %cst_8 = arith.constant 0.000000e+00 : f32
    %29 = vector.broadcast %cst_8 : f32 to vector<8x1xf32>
    %30 = arith.select %9, %28, %29 : vector<8x1xi1>, vector<8x1xf32>
    %31 = vector.shape_cast %30 : vector<8x1xf32> to vector<1x8x1xf32>
    %cst_9 = arith.constant dense<0.000000e+00> : vector<1xf32>
    %32 = vector.multi_reduction <add>, %31, %cst_9 [1, 2] : vector<1x8x1xf32> to vector<1xf32>
    %33 = vector.shape_cast %32 : vector<1xf32> to vector<1x1x1xf32>
    %34 = vector.extract %33[0, 0, 0] : f32 from vector<1x1x1xf32>
    %35 = vector.broadcast %34 : f32 to vector<1x128xf32>
    %c0_10 = arith.constant 0 : index
    %c0_11 = arith.constant 0 : index
    %36 = vector.load %arg3[%c0_10, %c0_11] : memref<1x128xf32, #tpu.memory_space<vmem>>, vector<1x128xf32>
    tpu.vector_store %arg3[%c0_10, %c0_11], %35 {strides = array<i32>} : memref<1x128xf32, #tpu.memory_space<vmem>>, vector<1x128xf32>,
    return
  }
  func.func @transform_0(%arg0: i32) -> (i32, i32) {
    %c0_i32 = arith.constant 0 : i32
    %c0_i32_0 = arith.constant 0 : i32
    return %arg0, %c0_i32 : i32, i32
  }
  func.func @transform_1(%arg0: i32) -> (i32, i32) {
    %c0_i32 = arith.constant 0 : i32
    %c0_i32_0 = arith.constant 0 : i32
    return %arg0, %c0_i32 : i32, i32
  }
  func.func @transform_2(%arg0: i32) -> (i32, i32) {
    %c0_i32 = arith.constant 0 : i32
    %c0_i32_0 = arith.constant 0 : i32
    return %arg0, %c0_i32 : i32, i32
  }
}

</mosaic_0001>

<bundles_post_ra>
// kernel: tpu_custom_call.1
= control target key start
LH: loop header
LB: loop body
LE: loop exit
PB: predicated region body
PF: predicated region fallthrough
CT: control target
= control target key end

     0   :  { %vm20_vm0 = vcmask 826368   ;;  %s135_s0 = inlined_call_operand.vmem [shape: f32[8,101], index: 0, kind: input, shape index: {}]   ;;  %s136_s1 = inlined_call_operand.vmem [shape: s32[8,1], index: 1, kind: input, shape index: {}]   ;;  %s137_s2 = inlined_call_operand.hbm [shape: f32[1,128], index: 2, kind: output, shape index: {}]  }
   0x1   :  { %v12_v0 = vld [vmem:[%s135_s0] sm:$0xff] }
   0x2   :  { %7 = vsyncpa [#allocation3], 0  ;;  %v21_v1 = vsel %vm20_vm0, %v12_v0, -inf  ;;  %v105_v2 = vmov 0   ;;  %v13_v3 = vld [vmem:[%s136_s1] sm:$0xff]  ;;  %v33_v7 = vlaneseq  ;;  %vm46_vm2 = vcmask 7168  }
   0x3   :  { %78 = vset.pattern.permute.xlu0 %v105_v2  ;;  %v106_v10 = vmov 0.000990099   ;;  %s107_s0 = smov [#allocation2]  }
   0x4   :  { %22 = vmax.xlane.f32.xlu0 %v21_v1  ;;  %v34_v8 = vand.u32 127, %v33_v7  ;;  %s65_s1 = sshll.u32 %s107_s0, 4  ;;  %s66_s1 = int_to_ptr.vmem [resolvable:$true] %s65_s1 }
   0x5   :  { %s83_s14 = scalar_lea.vmem %s66_s1, 16  ;;  %s87_s15 = scalar_lea.vmem %s66_s1, 32 }
   0x6   :  { %p84_p0 = scmp.ne.s32.totalorder %s66_s1, %s83_s14  ;;  %p88_p1 = scmp.lt.s32.totalorder %s66_s1, %s66_s1 }
   0x7   :  { %p89_p2 = scmp.lt.s32.totalorder %s87_s15, %s83_s14 }
   0x9   :  { %p90_p3 = por %p89_p2, %p88_p1 }
   0xb   :  { %p91_p4 = pnand %p90_p3, %p84_p0 }
  0x1a   :  { %36 = vperm.xlu0 %78, %v13_v3  }
  0x8d   :  { %v23_v4 = vpop.xlane.xlu0 %22 }
  0x8e   :  { %v24_v5 = vsub.f32 %v12_v0, %v23_v4 }
  0x90   :  { %v25_v6 = vmul.f32 1.442695, %v24_v5 }
  0x92   :  { %79 = vpow2.f32 %v25_v6 }
  0x95   :  { %v37_v9 = vpop.permute.xlu0 %36 }
  0x96   :  { %vm38_vm1 = vcmp.eq.s32.totalorder %v34_v8, %v37_v9 }
  0x97   :  { %v39_v11 = vsel %vm38_vm1, 0.9009901, %v106_v10 }
  0x98   :  { %v40_v12 = vmul.f32 %v39_v11, %v12_v0 }
  0x9a   :  { %v41_v15 = vsel %vm20_vm0, %v40_v12, 0.0 }
  0x9f   :  { %v80_v13 = vpop.eup %79 }
  0xa0   :  { %v27_v14 = vsel %vm20_vm0, %v80_v13, 0.0 }
  0xa1   :  { %28 = vadd.xlane.f32.xlu1 %v27_v14 }
  0xa5   :  { %42 = vadd.xlane.f32.xlu1 %v41_v15 }
 0x12a   :  { %v29_v16 = vpop.xlane.xlu1 %28 }
 0x12b   :  { %81 = vlog2.f32 %v29_v16 }
 0x12e   :  { %v43_v19 = vpop.xlane.xlu1 %42 }
 0x138   :  { %v82_v17 = vpop.eup %81 }
 0x139   :  { %v31_v18 = vmul.f32 0.6931472, %v82_v17 }
 0x13b   :  { %v32_v20 = vadd.f32 %v31_v18, %v23_v4 }
 0x13d   :  { %v44_v21 = vsub.f32 %v32_v20, %v43_v19 }
 0x13f   :  { %v47_v22 = vsel %vm46_vm2, %v44_v21, 0.0 }
 0x140   :  { %48 = vadd.xlane.f32.xlu1 %v47_v22 }
 0x1c9   :  { %v49_v23 = vpop.xlane.xlu1 %48 }
 0x1ca   :  { %v50_v24 = vrot.slane %v49_v23, 4 }
 0x1cc   :  { %v51_v25 = vadd.f32 %v50_v24, %v49_v23 }
 0x1ce   :  { %v52_v26 = vrot.slane %v51_v25, 2 }
 0x1d0   :  { %v53_v27 = vadd.f32 %v52_v26, %v51_v25 }
 0x1d2   :  { %v54_v28 = vrot.slane %v53_v27, 1 }
 0x1d4   :  { %v55_v29 = vadd.f32 %v54_v28, %v53_v27 }
 0x1d6   :  { %73 = vpush %v55_v29 }
 0x207   :  { %s74_s13 = spop %73 }
 0x208   :  { %v57_v30 = vstv %s74_s13 }
 0x209   :  { %58 = vst [vmem:[#allocation2] sm:$0x1] %v57_v30 }
 0x20a   :  { %94 = shalt.err (!%p91_p4)
}
 0x20b   :  { %68 = dma.vmem_to_hbm [thread:$0]  %s66_s1, 16, %s137_s2, [#allocation3]  }
 0x20c   :  { %103 = dma.done.wait [#allocation3], 16  }
 0x20d   :  { %104 = vsyncadd [#allocation3], 4294967280 }
 0x20e   :  { %72 = vsyncpa [#allocation3], 1 }

</bundles_post_ra>
